<compile_context>
chip_gen: v7x
topology: tpu7x:2x2x1
jax: 0.10.0
libtpu: 0.0.40
codegen_flags: <defaults>
</compile_context>

<pallas_src>
import functools

import jax
import jax.numpy as jnp
from jax import lax
from jax.experimental import pallas as pl
from jax.experimental.pallas import tpu as pltpu


def _inception_kernel(x_ref, wb_ref, wa_ref, gamma_ref, beta_ref,
                      out_ref, s_ref, q_ref,
                      *, B, T, T_pad, NF, k_max, pad_side, pad_max, eps,
                      compute_dtype):
    """One grid step = one batch element; BN + ReLU applied at the last step.

    x_ref:      (1, C_in, W)            zero-padded input slab (W lane-dense)
    wb_ref:     (NF, C_in)              bottleneck 1x1 weight
    wa_ref:     (4*NF, k_max*NF + C_in) fused weight: block-sparse conv paths
                                        (first k_max*NF cols) + maxpool 1x1
                                        (last C_in cols, rows 3NF:4NF)
    gamma/beta: (4*NF, 1)               BatchNorm affine parameters
    out_ref:    (B, 4*NF, T_pad)        resident output block (pre-BN concat,
                                        normalized in place at the last step)
    s_ref/q_ref:(4*NF, 1)               running per-channel sum / sum-of-squares
    """
    b = pl.program_id(0)

    @pl.when(b == 0)
    def _():
        s_ref[...] = jnp.zeros_like(s_ref)
        q_ref[...] = jnp.zeros_like(q_ref)

    xzp = x_ref[0].astype(compute_dtype)                       # (C_in, W)

    # Bottleneck 1x1 conv (bias=False); zero padding commutes with it.
    xc_pad = jnp.dot(wb_ref[...], xzp,
                     preferred_element_type=jnp.float32)       # (NF, W) f32
    xc_pad = xc_pad.astype(compute_dtype)

    # MaxPool1d(3, stride=1, padding=1) on the raw input; PyTorch pads with
    # -inf, so mask the out-of-range neighbours at t == 0 / t == T-1.
    lane = lax.broadcasted_iota(jnp.int32, (1, T_pad), 1)
    ctr = xzp[:, pad_side: pad_side + T_pad]
    lft = xzp[:, pad_side - 1: pad_side - 1 + T_pad]
    rgt = xzp[:, pad_side + 1: pad_side + 1 + T_pad]
    neg_inf = jnp.array(-jnp.inf, dtype=compute_dtype)
    lft = jnp.where(lane == 0, neg_inf, lft)
    rgt = jnp.where(lane == T - 1, neg_inf, rgt)
    pooled = jnp.maximum(jnp.maximum(ctr, lft), rgt)           # (C_in, T_pad)

    # Combined activation stack: row block j (j < k_max) holds the bottleneck
    # activation shifted by tap offset j of the widest kernel; the trailing
    # C_in rows hold the pooled raw input for the maxpool 1x1 path.
    off0 = pad_side - pad_max
    x_all = jnp.concatenate(
        [xc_pad[:, off0 + j: off0 + j + T_pad] for j in range(k_max)]
        + [pooled],
        axis=0)                                  # (k_max*NF + C_in, T_pad)

    # Whole 4*NF-channel concat (3 conv paths + maxpool path) in one matmul.
    cat_b = jnp.dot(wa_ref[...], x_all,
                    preferred_element_type=jnp.float32)        # (4*NF, T_pad)

    out_ref[b] = cat_b                                         # lane-dense store

    # Fused BatchNorm statistics (columns >= T are lane padding -> excluded).
    valid = lane < T
    cm = jnp.where(valid, cat_b, 0.0)
    s_ref[...] += jnp.sum(cm, axis=1, keepdims=True)
    q_ref[...] += jnp.sum(cm * cm, axis=1, keepdims=True)

    # Epilogue: BatchNorm1d (training-mode batch stats) + ReLU, in place.
    # TODO(synk): running_mean / running_var (momentum) buffer updates are not
    # modeled; only the forward normalization is reproduced.
    @pl.when(b == pl.num_programs(0) - 1)
    def _():
        n = float(B * T)
        mean = s_ref[...] / n                                  # (4*NF, 1)
        var = jnp.maximum(q_ref[...] / n - mean * mean, 0.0)   # biased variance
        inv = lax.rsqrt(var + eps)
        scale = gamma_ref[...] * inv
        shift = beta_ref[...] - mean * scale
        y = out_ref[...] * scale[None, :, :] + shift[None, :, :]
        out_ref[...] = jnp.maximum(y, 0.0)


def inception_module_forward(x, params, *, n_filters, kernel_sizes,
                             compute_dtype=jnp.float32):
    """Pallas-backed InceptionModule forward.  x: (B, C_in, T) float32.

    Assumes the bottleneck path (in_channels > 1), matching the module default.
    """
    B, C, T = x.shape
    NF = n_filters
    k_max = max(kernel_sizes)
    pad_max = (k_max - 1) // 2
    pad_side = max(pad_max, 1)                    # >= 1 so maxpool slices fit
    T_pad = ((T + 127) // 128) * 128              # lane-dense output width
    W = ((T_pad + 2 * pad_side + 127) // 128) * 128   # lane-dense input slab

    # Zero padding is exact for every conv (all bias=False); columns >= T are
    # also zero so they double as the right-hand 'same' padding.
    x_p = jnp.pad(x.astype(jnp.float32),
                  ((0, 0), (0, 0), (pad_side, W - T - pad_side)))
    x_p = x_p.astype(compute_dtype)

    # Fused weight: block-sparse conv-path taps (tap i of path P with kernel
    # k_P, pad p_P lands in column block pad_max - p_P + i) plus the maxpool
    # 1x1 weight in the trailing C columns (rows 3NF:4NF).
    K_in = k_max * NF + C
    w_all = jnp.zeros((4 * NF, K_in), jnp.float32)
    for p_idx, k in enumerate(kernel_sizes):
        w = params["paths"][p_idx]                # torch layout (out=NF, in=NF, k)
        pad = (k - 1) // 2
        for i in range(k):
            j = pad_max - pad + i
            w_all = w_all.at[p_idx * NF:(p_idx + 1) * NF,
                             j * NF:(j + 1) * NF].set(w[:, :, i])
    w_all = w_all.at[3 * NF:4 * NF, k_max * NF:].set(params["maxpool"])

    wb = params["bottleneck"].astype(compute_dtype)            # (NF, C)
    w_all = w_all.astype(compute_dtype)
    gamma = params["gamma"].reshape(4 * NF, 1).astype(jnp.float32)
    beta = params["beta"].reshape(4 * NF, 1).astype(jnp.float32)

    kernel = functools.partial(
        _inception_kernel, B=B, T=T, T_pad=T_pad, NF=NF, k_max=k_max,
        pad_side=pad_side, pad_max=pad_max, eps=1e-5,
        compute_dtype=compute_dtype)

    out = pl.pallas_call(
        kernel,
        out_shape=jax.ShapeDtypeStruct((B, 4 * NF, T_pad), jnp.float32),
        grid_spec=pltpu.PrefetchScalarGridSpec(
            num_scalar_prefetch=0,
            grid=(B,),
            in_specs=[
                pl.BlockSpec((1, C, W), lambda b: (b, 0, 0)),          # x slab
                pl.BlockSpec((NF, C), lambda b: (0, 0)),               # bottleneck
                pl.BlockSpec((4 * NF, K_in), lambda b: (0, 0)),        # fused weight
                pl.BlockSpec((4 * NF, 1), lambda b: (0, 0)),           # gamma
                pl.BlockSpec((4 * NF, 1), lambda b: (0, 0)),           # beta
            ],
            out_specs=pl.BlockSpec((B, 4 * NF, T_pad), lambda b: (0, 0, 0)),
            scratch_shapes=[pltpu.VMEM((4 * NF, 1), jnp.float32),
                            pltpu.VMEM((4 * NF, 1), jnp.float32)],
        ),
        compiler_params=pltpu.CompilerParams(
            # Output block + stats scratch carry across batch steps -> arbitrary.
            dimension_semantics=("arbitrary",),
            vmem_limit_bytes=32 * 1024 * 1024),
    )(x_p, wb, w_all, gamma, beta)

    return out[:, :, :T]


def reference_forward(x, params, *, n_filters, kernel_sizes):
    """Pure-JAX reference (lax.conv / reduce_window) for validation."""
    dn = ("NCH", "OIH", "NCH")
    wb = params["bottleneck"][:, :, None]                      # (NF, C, 1)
    xc = lax.conv_general_dilated(x, wb, (1,), [(0, 0)], dimension_numbers=dn)
    outs = []
    for w, k in zip(params["paths"], kernel_sizes):
        pad = (k - 1) // 2
        outs.append(lax.conv_general_dilated(xc, w, (1,), [(pad, pad)],
                                             dimension_numbers=dn))
    pooled = lax.reduce_window(x, -jnp.inf, lax.max, (1, 1, 3), (1, 1, 1),
                               ((0, 0), (0, 0), (1, 1)))
    wm = params["maxpool"][:, :, None]
    outs.append(lax.conv_general_dilated(pooled, wm, (1,), [(0, 0)],
                                         dimension_numbers=dn))
    cat = jnp.concatenate(outs, axis=1)
    mean = jnp.mean(cat, axis=(0, 2), keepdims=True)
    var = jnp.mean((cat - mean) ** 2, axis=(0, 2), keepdims=True)
    y = (cat - mean) / jnp.sqrt(var + 1e-5)
    y = y * params["gamma"][None, :, None] + params["beta"][None, :, None]
    return jnp.maximum(y, 0.0)


def make_params(key, in_channels, n_filters, kernel_sizes):
    """Deterministic synthetic parameters (PyTorch Conv1d weight layout (O, I, K))."""
    ks = jax.random.split(key, 4 + len(kernel_sizes))
    params = {
        "bottleneck": 0.2 * jax.random.normal(ks[0], (n_filters, in_channels),
                                              jnp.float32),
        "maxpool": 0.2 * jax.random.normal(ks[1], (n_filters, in_channels),
                                           jnp.float32),
        "gamma": 1.0 + 0.1 * jax.random.normal(ks[2], (4 * n_filters,), jnp.float32),
        "beta": 0.1 * jax.random.normal(ks[3], (4 * n_filters,), jnp.float32),
        "paths": [],
    }
    for i, k in enumerate(kernel_sizes):
        params["paths"].append(
            0.2 * jax.random.normal(ks[4 + i], (n_filters, n_filters, k),
                                    jnp.float32))
    return params


if __name__ == "__main__":
    # Small config consistent with the module: use_bottleneck=True (in_channels > 1).
    B, C_IN, T = 2, 4, 64
    N_FILTERS = 8
    KERNEL_SIZE = 8                               # module default is 40; small demo
    kernel_sizes = [KERNEL_SIZE // 2 ** i for i in range(3)]
    kernel_sizes = [k if k % 2 != 0 else k - 1 for k in kernel_sizes]   # [7, 3, 1]

    key = jax.random.PRNGKey(0)
    k_x, k_p = jax.random.split(key)
    x = jax.random.normal(k_x, (B, C_IN, T), jnp.float32)
    params = make_params(k_p, C_IN, N_FILTERS, kernel_sizes)

    out = jax.block_until_ready(
        inception_module_forward(x, params, n_filters=N_FILTERS,
                                 kernel_sizes=kernel_sizes))
    ref = jax.block_until_ready(
        reference_forward(x, params, n_filters=N_FILTERS,
                          kernel_sizes=kernel_sizes))

    assert out.shape == (B, 4 * N_FILTERS, T), out.shape
    assert jnp.allclose(out, ref, rtol=1e-3, atol=1e-3), \
        float(jnp.max(jnp.abs(out - ref)))
    print("KERNEL_OK")
</pallas_src>

<mosaic_0001>
module attributes {stable_mosaic.version = 11 : i64} {
  func.func @_inception_kernel(%arg0: i32, %arg1: memref<1x4x256xf32, #tpu.memory_space<vmem>>, %arg2: memref<8x4xf32, #tpu.memory_space<vmem>>, %arg3: memref<32x60xf32, #tpu.memory_space<vmem>>, %arg4: memref<32x1xf32, #tpu.memory_space<vmem>>, %arg5: memref<32x1xf32, #tpu.memory_space<vmem>>, %arg6: memref<2x32x128xf32, #tpu.memory_space<vmem>>, %arg7: memref<32x1xf32, #tpu.memory_space<vmem>>, %arg8: memref<32x1xf32, #tpu.memory_space<vmem>>) attributes {dimension_semantics = [#tpu.dimension_semantics<arbitrary>], iteration_bounds = array<i64: 2>, scalar_prefetch = 0 : i64, scratch_operands = 2 : i64, tpu.core_type = #tpu.core_type<tc>, window_params = [{transform_indices = @transform_0, window_bounds = array<i64: 1, 4, 256>}, {pipeline_mode = #tpu.pipeline_mode<synchronous>, transform_indices = @transform_1, window_bounds = array<i64: 8, 4>}, {pipeline_mode = #tpu.pipeline_mode<synchronous>, transform_indices = @transform_2, window_bounds = array<i64: 32, 60>}, {pipeline_mode = #tpu.pipeline_mode<synchronous>, transform_indices = @transform_3, window_bounds = array<i64: 32, 1>}, {pipeline_mode = #tpu.pipeline_mode<synchronous>, transform_indices = @transform_4, window_bounds = array<i64: 32, 1>}, {pipeline_mode = #tpu.pipeline_mode<synchronous>, transform_indices = @transform_5, window_bounds = array<i64: 2, 32, 128>}]} {
    %c0_i32 = arith.constant 0 : i32
    %0 = arith.cmpi eq, %arg0, %c0_i32 : i32
    %1 = arith.extui %0 : i1 to i32
    %c0_i32_0 = arith.constant 0 : i32
    %2 = arith.cmpi ne, %1, %c0_i32_0 : i32
    scf.if %2 {
      %cst_25 = arith.constant 0.000000e+00 : f32
      %59 = vector.broadcast %cst_25 : f32 to vector<32x1xf32>
      %c0_26 = arith.constant 0 : index
      %c0_27 = arith.constant 0 : index
      %60 = vector.load %arg7[%c0_26, %c0_27] : memref<32x1xf32, #tpu.memory_space<vmem>>, vector<32x1xf32>
      tpu.vector_store %arg7[%c0_26, %c0_27], %59 {strides = array<i32>} : memref<32x1xf32, #tpu.memory_space<vmem>>, vector<32x1xf32>,
      %cst_28 = arith.constant 0.000000e+00 : f32
      %61 = vector.broadcast %cst_28 : f32 to vector<32x1xf32>
      %c0_29 = arith.constant 0 : index
      %c0_30 = arith.constant 0 : index
      %62 = vector.load %arg8[%c0_29, %c0_30] : memref<32x1xf32, #tpu.memory_space<vmem>>, vector<32x1xf32>
      tpu.vector_store %arg8[%c0_29, %c0_30], %61 {strides = array<i32>} : memref<32x1xf32, #tpu.memory_space<vmem>>, vector<32x1xf32>,
    } else {
    }
    %c0 = arith.constant 0 : index
    %c0_1 = arith.constant 0 : index
    %c0_2 = arith.constant 0 : index
    %3 = vector.load %arg1[%c0, %c0_1, %c0_2] : memref<1x4x256xf32, #tpu.memory_space<vmem>>, vector<1x4x256xf32>
    %4 = vector.shape_cast %3 : vector<1x4x256xf32> to vector<4x256xf32>
    %c0_3 = arith.constant 0 : index
    %c0_4 = arith.constant 0 : index
    %5 = vector.load %arg2[%c0_3, %c0_4] : memref<8x4xf32, #tpu.memory_space<vmem>>, vector<8x4xf32>
    %cst = arith.constant dense<0.000000e+00> : vector<8x256xf32>
    %6 = tpu.matmul %5, %4, %cst {dimension_numbers = #tpu.dot_dimension_numbers<[1], [0], [0], [1], [0, 0, 1, 1], [], []>} : vector<8x4xf32>, vector<4x256xf32>, vector<8x256xf32> -> vector<8x256xf32>
    %7 = tpu.iota {dimensions = array<i32: 1>} : vector<1x128xi32>
    %8 = vector.extract_strided_slice %4 {offsets = [0, 3], sizes = [4, 128], strides = [1, 1]} : vector<4x256xf32> to vector<4x128xf32>
    %9 = vector.extract_strided_slice %4 {offsets = [0, 2], sizes = [4, 128], strides = [1, 1]} : vector<4x256xf32> to vector<4x128xf32>
    %10 = vector.extract_strided_slice %4 {offsets = [0, 4], sizes = [4, 128], strides = [1, 1]} : vector<4x256xf32> to vector<4x128xf32>
    %c0_i32_5 = arith.constant 0 : i32
    %11 = vector.broadcast %c0_i32_5 : i32 to vector<1x128xi32>
    %12 = arith.cmpi eq, %7, %11 : vector<1x128xi32>
    %cst_6 = arith.constant 0xFF800000 : f32
    %13 = vector.shape_cast %12 : vector<1x128xi1> to vector<1x128xi1>
    %14 = vector.broadcast %13 : vector<1x128xi1> to vector<4x128xi1>
    %15 = vector.broadcast %cst_6 : f32 to vector<4x128xf32>
    %16 = arith.select %14, %15, %9 : vector<4x128xi1>, vector<4x128xf32>
    %c63_i32 = arith.constant 63 : i32
    %17 = vector.broadcast %c63_i32 : i32 to vector<1x128xi32>
    %18 = arith.cmpi eq, %7, %17 : vector<1x128xi32>
    %cst_7 = arith.constant 0xFF800000 : f32
    %19 = vector.shape_cast %18 : vector<1x128xi1> to vector<1x128xi1>
    %20 = vector.broadcast %19 : vector<1x128xi1> to vector<4x128xi1>
    %21 = vector.broadcast %cst_7 : f32 to vector<4x128xf32>
    %22 = arith.select %20, %21, %10 : vector<4x128xi1>, vector<4x128xf32>
    %23 = arith.maximumf %8, %16 : vector<4x128xf32>
    %24 = arith.maximumf %23, %22 : vector<4x128xf32>
    %25 = vector.extract_strided_slice %6 {offsets = [0, 0], sizes = [8, 128], strides = [1, 1]} : vector<8x256xf32> to vector<8x128xf32>
    %26 = vector.extract_strided_slice %6 {offsets = [0, 1], sizes = [8, 128], strides = [1, 1]} : vector<8x256xf32> to vector<8x128xf32>
    %27 = vector.extract_strided_slice %6 {offsets = [0, 2], sizes = [8, 128], strides = [1, 1]} : vector<8x256xf32> to vector<8x128xf32>
    %28 = vector.extract_strided_slice %6 {offsets = [0, 3], sizes = [8, 128], strides = [1, 1]} : vector<8x256xf32> to vector<8x128xf32>
    %29 = vector.extract_strided_slice %6 {offsets = [0, 4], sizes = [8, 128], strides = [1, 1]} : vector<8x256xf32> to vector<8x128xf32>
    %30 = vector.extract_strided_slice %6 {offsets = [0, 5], sizes = [8, 128], strides = [1, 1]} : vector<8x256xf32> to vector<8x128xf32>
    %31 = vector.extract_strided_slice %6 {offsets = [0, 6], sizes = [8, 128], strides = [1, 1]} : vector<8x256xf32> to vector<8x128xf32>
    %32 = tpu.concatenate %25, %26, %27, %28, %29, %30, %31, %24 in 0 : vector<8x128xf32>, vector<8x128xf32>, vector<8x128xf32>, vector<8x128xf32>, vector<8x128xf32>, vector<8x128xf32>, vector<8x128xf32>, vector<4x128xf32> -> vector<60x128xf32>
    %c0_8 = arith.constant 0 : index
    %c0_9 = arith.constant 0 : index
    %33 = vector.load %arg3[%c0_8, %c0_9] : memref<32x60xf32, #tpu.memory_space<vmem>>, vector<32x60xf32>
    %cst_10 = arith.constant dense<0.000000e+00> : vector<32x128xf32>
    %34 = tpu.matmul %33, %32, %cst_10 {dimension_numbers = #tpu.dot_dimension_numbers<[1], [0], [0], [1], [0, 0, 1, 1], [], []>} : vector<32x60xf32>, vector<60x128xf32>, vector<32x128xf32> -> vector<32x128xf32>
    %35 = arith.index_cast %arg0 : i32 to index
    %c0_11 = arith.constant 0 : index
    %c0_12 = arith.constant 0 : index
    %36 = vector.load %arg6[%35, %c0_11, %c0_12] : memref<2x32x128xf32, #tpu.memory_space<vmem>>, vector<1x32x128xf32>
    %37 = vector.shape_cast %36 : vector<1x32x128xf32> to vector<32x128xf32>
    %38 = vector.shape_cast %34 : vector<32x128xf32> to vector<1x32x128xf32>
    tpu.vector_store %arg6[%35, %c0_11, %c0_12], %38 {strides = array<i32>} : memref<2x32x128xf32, #tpu.memory_space<vmem>>, vector<1x32x128xf32>,
    %c64_i32 = arith.constant 64 : i32
    %39 = vector.broadcast %c64_i32 : i32 to vector<1x128xi32>
    %40 = arith.cmpi slt, %7, %39 : vector<1x128xi32>
    %cst_13 = arith.constant 0.000000e+00 : f32
    %41 = vector.shape_cast %40 : vector<1x128xi1> to vector<1x128xi1>
    %42 = vector.broadcast %41 : vector<1x128xi1> to vector<32x128xi1>
    %43 = vector.broadcast %cst_13 : f32 to vector<32x128xf32>
    %44 = arith.select %42, %34, %43 : vector<32x128xi1>, vector<32x128xf32>
    %c0_14 = arith.constant 0 : index
    %c0_15 = arith.constant 0 : index
    %45 = vector.load %arg7[%c0_14, %c0_15] : memref<32x1xf32, #tpu.memory_space<vmem>>, vector<32x1xf32>
    %cst_16 = arith.constant dense<0.000000e+00> : vector<32xf32>
    %46 = vector.multi_reduction <add>, %44, %cst_16 [1] : vector<32x128xf32> to vector<32xf32>
    %47 = vector.shape_cast %46 : vector<32xf32> to vector<32x1xf32>
    %48 = arith.addf %45, %47 : vector<32x1xf32>
    %c0_17 = arith.constant 0 : index
    %c0_18 = arith.constant 0 : index
    %49 = vector.load %arg7[%c0_17, %c0_18] : memref<32x1xf32, #tpu.memory_space<vmem>>, vector<32x1xf32>
    tpu.vector_store %arg7[%c0_17, %c0_18], %48 {strides = array<i32>} : memref<32x1xf32, #tpu.memory_space<vmem>>, vector<32x1xf32>,
    %c0_19 = arith.constant 0 : index
    %c0_20 = arith.constant 0 : index
    %50 = vector.load %arg8[%c0_19, %c0_20] : memref<32x1xf32, #tpu.memory_space<vmem>>, vector<32x1xf32>
    %51 = arith.mulf %44, %44 : vector<32x128xf32>
    %cst_21 = arith.constant dense<0.000000e+00> : vector<32xf32>
    %52 = vector.multi_reduction <add>, %51, %cst_21 [1] : vector<32x128xf32> to vector<32xf32>
    %53 = vector.shape_cast %52 : vector<32xf32> to vector<32x1xf32>
    %54 = arith.addf %50, %53 : vector<32x1xf32>
    %c0_22 = arith.constant 0 : index
    %c0_23 = arith.constant 0 : index
    %55 = vector.load %arg8[%c0_22, %c0_23] : memref<32x1xf32, #tpu.memory_space<vmem>>, vector<32x1xf32>
    tpu.vector_store %arg8[%c0_22, %c0_23], %54 {strides = array<i32>} : memref<32x1xf32, #tpu.memory_space<vmem>>, vector<32x1xf32>,
    %c1_i32 = arith.constant 1 : i32
    %56 = arith.cmpi eq, %arg0, %c1_i32 : i32
    %57 = arith.extui %56 : i1 to i32
    %c0_i32_24 = arith.constant 0 : i32
    %58 = arith.cmpi ne, %57, %c0_i32_24 : i32
    scf.if %58 {
      %c0_25 = arith.constant 0 : index
      %c0_26 = arith.constant 0 : index
      %59 = vector.load %arg7[%c0_25, %c0_26] : memref<32x1xf32, #tpu.memory_space<vmem>>, vector<32x1xf32>
      %cst_27 = arith.constant 1.280000e+02 : f32
      %60 = vector.broadcast %cst_27 : f32 to vector<32x1xf32>
      %61 = arith.divf %59, %60 : vector<32x1xf32>
      %c0_28 = arith.constant 0 : index
      %c0_29 = arith.constant 0 : index
      %62 = vector.load %arg8[%c0_28, %c0_29] : memref<32x1xf32, #tpu.memory_space<vmem>>, vector<32x1xf32>
      %cst_30 = arith.constant 1.280000e+02 : f32
      %63 = vector.broadcast %cst_30 : f32 to vector<32x1xf32>
      %64 = arith.divf %62, %63 : vector<32x1xf32>
      %65 = arith.mulf %61, %61 : vector<32x1xf32>
      %66 = arith.subf %64, %65 : vector<32x1xf32>
      %cst_31 = arith.constant 0.000000e+00 : f32
      %67 = vector.broadcast %cst_31 : f32 to vector<32x1xf32>
      %68 = arith.maximumf %66, %67 : vector<32x1xf32>
      %cst_32 = arith.constant 9.99999974E-6 : f32
      %69 = vector.broadcast %cst_32 : f32 to vector<32x1xf32>
      %70 = arith.addf %68, %69 : vector<32x1xf32>
      %71 = math.rsqrt %70 : vector<32x1xf32>
      %c0_33 = arith.constant 0 : index
      %c0_34 = arith.constant 0 : index
      %72 = vector.load %arg4[%c0_33, %c0_34] : memref<32x1xf32, #tpu.memory_space<vmem>>, vector<32x1xf32>
      %73 = arith.mulf %72, %71 : vector<32x1xf32>
      %c0_35 = arith.constant 0 : index
      %c0_36 = arith.constant 0 : index
      %74 = vector.load %arg5[%c0_35, %c0_36] : memref<32x1xf32, #tpu.memory_space<vmem>>, vector<32x1xf32>
      %75 = arith.mulf %61, %73 : vector<32x1xf32>
      %76 = arith.subf %74, %75 : vector<32x1xf32>
      %c0_37 = arith.constant 0 : index
      %c0_38 = arith.constant 0 : index
      %c0_39 = arith.constant 0 : index
      %77 = vector.load %arg6[%c0_37, %c0_38, %c0_39] : memref<2x32x128xf32, #tpu.memory_space<vmem>>, vector<2x32x128xf32>
      %78 = vector.shape_cast %73 : vector<32x1xf32> to vector<1x32x1xf32>
      %79 = vector.broadcast %78 : vector<1x32x1xf32> to vector<2x32x128xf32>
      %80 = arith.mulf %77, %79 : vector<2x32x128xf32>
      %81 = vector.shape_cast %76 : vector<32x1xf32> to vector<1x32x1xf32>
      %82 = vector.broadcast %81 : vector<1x32x1xf32> to vector<2x32x128xf32>
      %83 = arith.addf %80, %82 : vector<2x32x128xf32>
      %cst_40 = arith.constant 0.000000e+00 : f32
      %84 = vector.broadcast %cst_40 : f32 to vector<2x32x128xf32>
      %85 = arith.maximumf %83, %84 : vector<2x32x128xf32>
      %c0_41 = arith.constant 0 : index
      %c0_42 = arith.constant 0 : index
      %c0_43 = arith.constant 0 : index
      %86 = vector.load %arg6[%c0_41, %c0_42, %c0_43] : memref<2x32x128xf32, #tpu.memory_space<vmem>>, vector<2x32x128xf32>
      tpu.vector_store %arg6[%c0_41, %c0_42, %c0_43], %85 {strides = array<i32>} : memref<2x32x128xf32, #tpu.memory_space<vmem>>, vector<2x32x128xf32>,
    } else {
    }
    return
  }
  func.func @transform_0(%arg0: i32) -> (i32, i32, i32) {
    %c0_i32 = arith.constant 0 : i32
    %c0_i32_0 = arith.constant 0 : i32
    %c0_i32_1 = arith.constant 0 : i32
    return %arg0, %c0_i32, %c0_i32_0 : i32, i32, i32
  }
  func.func @transform_1(%arg0: i32) -> (i32, i32) {
    %c0_i32 = arith.constant 0 : i32
    %c0_i32_0 = arith.constant 0 : i32
    %c0_i32_1 = arith.constant 0 : i32
    return %c0_i32, %c0_i32_0 : i32, i32
  }
  func.func @transform_2(%arg0: i32) -> (i32, i32) {
    %c0_i32 = arith.constant 0 : i32
    %c0_i32_0 = arith.constant 0 : i32
    %c0_i32_1 = arith.constant 0 : i32
    return %c0_i32, %c0_i32_0 : i32, i32
  }
  func.func @transform_3(%arg0: i32) -> (i32, i32) {
    %c0_i32 = arith.constant 0 : i32
    %c0_i32_0 = arith.constant 0 : i32
    %c0_i32_1 = arith.constant 0 : i32
    return %c0_i32, %c0_i32_0 : i32, i32
  }
  func.func @transform_4(%arg0: i32) -> (i32, i32) {
    %c0_i32 = arith.constant 0 : i32
    %c0_i32_0 = arith.constant 0 : i32
    %c0_i32_1 = arith.constant 0 : i32
    return %c0_i32, %c0_i32_0 : i32, i32
  }
  func.func @transform_5(%arg0: i32) -> (i32, i32, i32) {
    %c0_i32 = arith.constant 0 : i32
    %c0_i32_0 = arith.constant 0 : i32
    %c0_i32_1 = arith.constant 0 : i32
    %c0_i32_2 = arith.constant 0 : i32
    return %c0_i32, %c0_i32_0, %c0_i32_1 : i32, i32, i32
  }
}

</mosaic_0001>

<bundles_post_ra>
// kernel: tpu_custom_call.1
= control target key start
LH: loop header
LB: loop body
LE: loop exit
PB: predicated region body
PF: predicated region fallthrough
CT: control target
= control target key end

     0   :  { %10 = vsyncpa [#allocation5], 0  ;;  %s987_s18 = smov 0   ;;  %s1102_s0 = inlined_call_operand.vmem [shape: f32[2,4,256], index: 0, kind: input, shape index: {}]   ;;  %s1103_s1 = inlined_call_operand.vmem [shape: f32[8,4], index: 1, kind: input, shape index: {}]   ;;  %s1104_s2 = inlined_call_operand.vmem [shape: f32[32,60], index: 2, kind: input, shape index: {}]   ;;  %s1105_s3 = inlined_call_operand.vmem [shape: f32[32,1], index: 3, kind: input, shape index: {}]   ;;  %s1106_s4 = inlined_call_operand.vmem [shape: f32[32,1], index: 4, kind: input, shape index: {}]   ;;  %s1107_s5 = inlined_call_operand.hbm [shape: f32[2,32,128], index: 5, kind: output, shape index: {}]  }
   0x1 LB: > { %s993_s19 = sadd.s32 4294967295, %s941_s18   ;;  %p752_p0 = scmp.ge.s32.totalorder %s941_s18, 1  ;;  %s941_s18 = sphi %s987_s18, %s16_s18  }
   0x2   : > { %p183_p1 = scmp.lt.s32.totalorder %s941_s18, 3 }
   0x4   : > { %p184_p2 = pnand %p752_p0, %p183_p1 }
   0x5   : > { %p206_p3 = scmp.lt.s32.totalorder (!%p184_p2), %s993_s19, 1  ;;  %p755_p4 = scmp.ne.s32.totalorder (!%p184_p2), %s993_s19, 0 }
   0x6   : > { %187 = sbr.rel (%p184_p2) target bundleno = 963 (0x3c3), region = 40 }
   0xd   : > { %s207_s20 = scalar_select %p206_p3, %s993_s19, 1 }
   0xe   : > { %214 = sbr.rel (%p755_p4) target bundleno = 21 (0x15), region = 44  ;;  %vm215_vm0 = vcmask (!%p755_p4), 7168   ;;  %v943_v0 = vmov (!%p755_p4), 0.0  }
   0xf   : > { %s770_s21 = sshll.u32 %s207_s20, 3  ;;  %216 = vst.msk [vmem:[#allocation2] sm:$0xff] (!%p755_p4), %vm215_vm0, %v943_v0  ;;  %217 = vst.msk [vmem:[#allocation2 + $0x8] sm:$0xff] (!%p755_p4), %vm215_vm0, %v943_v0 }
  0x10   : > { %s210_s24 = scalar_lea.vmem %s1102_s0, %s770_s21  ;;  %218 = vst.msk [vmem:[#allocation2 + $0x10] sm:$0xff] (!%p755_p4), %vm215_vm0, %v943_v0  ;;  %219 = vst.msk [vmem:[#allocation2 + $0x18] sm:$0xff] (!%p755_p4), %vm215_vm0, %v943_v0 }
  0x11   : > { %220 = vst.msk [vmem:[#allocation3] sm:$0xff] (!%p755_p4), %vm215_vm0, %v943_v0  ;;  %221 = vst.msk [vmem:[#allocation3 + $0x8] sm:$0xff] (!%p755_p4), %vm215_vm0, %v943_v0 }
  0x12   : > { %222 = vst.msk [vmem:[#allocation3 + $0x10] sm:$0xff] (!%p755_p4), %vm215_vm0, %v943_v0  ;;  %223 = vst.msk [vmem:[#allocation3 + $0x18] sm:$0xff] (!%p755_p4), %vm215_vm0, %v943_v0 }
  0x15 PF: > { %v224_v1 = vld [vmem:[%s210_s24] sm:$0xff]  ;;  %vm232_vm1 = vcmask 1043456   ;;  %s944_s25 = smov 124   ;;  %s945_s26 = smov 126   ;;  %v946_v3 = vmov 0.0   ;;  %vm228_vm2 = vcmask 31744   ;;  %v308_v5 = vlaneseq }
  0x16   : > { %324 = vrot.lane.b32.xlu1 %v224_v1, %s944_s25  ;;  %313 = vrot.lane.b32.xlu0 %v224_v1, %s945_s26  ;;  %v227_v2 = vcombine.high %v224_v1, %v224_v1  ;;  %v225_v4 = vld [vmem:[%s1103_s1] sm:$0xff]  ;;  %vm328_vm3 = vcmask 1014784   ;;  %vm317_vm4 = vcmask 1031168   ;;  %s947_s29 = smov 3   ;;  %s948_s30 = smov 127   ;;  %vm336_vm7 = vcmask 23552  }
  0x17   : > { %301 = vmatprep.mubr.f32.mxu0 %v946_v3  ;;  %v1012_v6 = vand.u32 127, %v308_v5  ;;  %s949_s6 = smov 125   ;;  %s950_s7 = smov 123   ;;  %v396_v25 = vld [vmem:[%s1104_s2] sm:$0xff]  ;;  %vm400_vm8 = vcmask 490496   ;;  %v398_v26 = vld [vmem:[%s1104_s2 + $0x10] sm:$0xff] }
  0x18   : > { %756 = vmatprep.subr.msk.mxu0 %vm232_vm1, %v227_v2  ;;  %s951_s8 = smov 122   ;;  %802 = vmatprep.mubr.msk.f32.mxu1 %vm400_vm8, %v398_v26  ;;  %vm353_vm9 = vcmask 1039360   ;;  %vm366_vm10 = vcmask 1022976   ;;  %vm379_vm11 = vcmask 1006592   ;;  %vm386_vm12 = vcmask 998400   ;;  %v397_v62 = vld [vmem:[%s1104_s2 + $0x8] sm:$0xff] }
  0x19   : > { %757 = vmatpush1.msk.msra.mxu0 %vm232_vm1, %v224_v1  ;;  %vm321_vm5 = vcmp.eq.s32.totalorder %v1012_v6, 63  ;;  %vm310_vm6 = vcmp.eq.s32.totalorder %v1012_v6, 0  ;;  %vm952_vm13 = vmmov 1   ;;  %v399_v63 = vld [vmem:[%s1104_s2 + $0x18] sm:$0xff]  ;;  %s764_s17 = sshll.u32 %s993_s19, 5  ;;  %vm506_vm15 = vcmp.lt.s32.totalorder %v1012_v6, 64 }
  0x1a   : > { %326 = vrot.lane.b32.xlu1 %v227_v2, %s944_s25  ;;  %315 = vrot.lane.b32.xlu0 %v227_v2, %s945_s26  ;;  %vm818_vm14 = vmpackc.low %vm232_vm1, %vm952_vm13  ;;  %s501_s20 = scalar_lea.vmem [#allocation4], %s764_s17  ;;  %vm529_vm0 = vcmask 7168   ;;  %p765_p5 = scmp.ne.s32.totalorder %s993_s19, 1 }
  0x1b   : > { %758 = vmatmul.mubr.msk.f32.vlgmr.msra.gmra.mrb[0].mxu0 %vm228_vm2, %v225_v4 }
  0x1c   : > { %799 = vmatprep.mubr.msk.f32.mxu0 %vm400_vm8, %v396_v25  ;;  %v534_v25 = vld [vmem:[#allocation3] sm:$0xff] }
  0x88   : > { %v325_v7 = vpop.permute.xlu1 %324  ;;  %v314_v8 = vpop.permute.xlu0 %313 }
  0x8c   : > { %v327_v9 = vpop.permute.xlu1 %326  ;;  %v316_v10 = vpop.permute.xlu0 %315 }
  0x8d   : > { %v329_v11 = vsel %vm328_vm3, %v325_v7, %v327_v9  ;;  %v318_v12 = vsel %vm317_vm4, %v314_v8, %v316_v10 }
  0x8e   : > { %v331_v13 = vsel %vm321_vm5, -inf, %v329_v11  ;;  %v320_v14 = vsel %vm310_vm6, -inf, %v318_v12  ;;  %v516_v12 = vld [vmem:[#allocation2 + $0x18] sm:$0xff] }
  0x8f   : > { %341 = vrot.lane.b32.xlu1 %v331_v13, %s947_s29  ;;  %333 = vrot.lane.b32.xlu0 %v320_v14, %s947_s29  ;;  %v514_v13 = vld [vmem:[#allocation2 + $0x8] sm:$0xff] }
  0xee   : > { %v303_v15 = vpop.f32.mrb[0].mxu0 }
  0xef   : > { %v305_v16 = vpop.f32.mrb[1].mxu0 }
  0xf0   : > { %v859_v17 = vpack.i.bf16 %v305_v16, %v303_v15 }
  0xf2   : > { %860 = vrot.lane.b32.xlu0 %v859_v17, %s948_s30  ;;  %865 = vrot.lane.b32.xlu1 %v859_v17, %s945_s26 }
  0xf6   : > { %870 = vrot.lane.b32.xlu0 %v859_v17, %s949_s6  ;;  %875 = vrot.lane.b32.xlu1 %v859_v17, %s944_s25 }
  0xfa   : > { %880 = vrot.lane.b32.xlu0 %v859_v17, %s950_s7  ;;  %885 = vrot.lane.b32.xlu1 %v859_v17, %s951_s8 }
 0x101   : > { %v342_v18 = vpop.permute.xlu1 %341  ;;  %v334_v19 = vpop.permute.xlu0 %333 }
 0x102   : > { %v343_v20 = vrot.slane %v342_v18, 4  ;;  %v335_v21 = vrot.slane %v334_v19, 4 }
 0x104   : > { %v337_v22 = vsel %vm336_vm7, %v335_v21, %v334_v19  ;;  %v344_v24 = vsel %vm336_vm7, %v343_v20, %v342_v18  ;;  %v515_v18 = vld [vmem:[#allocation2 + $0x10] sm:$0xff]  ;;  %v513_v19 = vld [vmem:[#allocation2] sm:$0xff] }
 0x105   : > { %v339_v23 = vmax.f32 %v224_v1, %v337_v22 }
 0x107   : > { %v346_v27 = vmax.f32 %v339_v23, %v344_v24  ;;  %v535_v24 = vld [vmem:[#allocation3 + $0x8] sm:$0xff] }
 0x109   : > { %v390_v28 = vcombine.high %v346_v27, %v346_v27 }
 0x10b   : > { %v889_v29 = vpack.i.bf16 %v390_v28, %v346_v27 }
 0x10d   : > { %890 = vrot.lane.b32.xlu0 %v889_v29, %s949_s6 }
 0x164   : > { %v861_v30 = vpop.permute.xlu0 %860  ;;  %v866_v31 = vpop.permute.xlu1 %865 }
 0x165   : > { %v863_v32 = vunpack.i.h.bf16 %v861_v30  ;;  %v862_v33 = vunpack.i.l.bf16 %v861_v30  ;;  %v868_v34 = vunpack.i.h.bf16 %v866_v31  ;;  %v867_v35 = vunpack.i.l.bf16 %v866_v31  ;;  %v537_v30 = vld [vmem:[#allocation3 + $0x18] sm:$0xff]  ;;  %v536_v31 = vld [vmem:[#allocation3 + $0x10] sm:$0xff] }
 0x167   : > { %v354_v36 = vsel %vm353_vm9, %v862_v33, %v863_v32  ;;  %v360_v38 = vsel %vm317_vm4, %v867_v35, %v868_v34 }
 0x168   : > { %v805_v37 = vpack.c.bf16 %v354_v36, %v303_v15  ;;  %v871_v39 = vpop.permute.xlu0 %870  ;;  %v876_v40 = vpop.permute.xlu1 %875 }
 0x169   : > { %v873_v41 = vunpack.i.h.bf16 %v871_v39  ;;  %v872_v42 = vunpack.i.l.bf16 %v871_v39  ;;  %v878_v43 = vunpack.i.h.bf16 %v876_v40  ;;  %v877_v44 = vunpack.i.l.bf16 %v876_v40 }
 0x16a   : > { %806 = vmatprep.subr.bf16.mxu0 %v805_v37  ;;  %823 = vmatprep.subr.bf16.mxu1 %v805_v37 }
 0x16b   : > { %808 = vmatpush3.bf16.msra.mxu0 %v805_v37  ;;  %827 = vmatpush3.bf16.msra.mxu1 %v805_v37  ;;  %v367_v45 = vsel %vm366_vm10, %v872_v42, %v873_v41  ;;  %v373_v48 = vsel %vm328_vm3, %v877_v44, %v878_v43 }
 0x16c   : > { %v809_v46 = vpack.c.bf16 %v367_v45, %v360_v38  ;;  %v881_v47 = vpop.permute.xlu0 %880  ;;  %v886_v53 = vpop.permute.xlu1 %885  ;;  %v953_v38 = vmov (!%p765_p5), 0  }
 0x16d   : > { %v883_v49 = vunpack.i.h.bf16 %v881_v47  ;;  %v882_v50 = vunpack.i.l.bf16 %v881_v47  ;;  %v888_v54 = vunpack.i.h.bf16 %v886_v53  ;;  %v887_v55 = vunpack.i.l.bf16 %v886_v53  ;;  %896 = vset.pattern.permute.xlu1 (!%p765_p5), %v953_v38  ;;  %895 = vset.pattern.permute.xlu0 (!%p765_p5), %v953_v38 }
 0x16e   : > { %810 = vmatprep.subr.bf16.mxu0 %v809_v46  ;;  %824 = vmatprep.subr.bf16.mxu1 %v809_v46 }
 0x16f   : > { %v380_v51 = vsel %vm379_vm11, %v882_v50, %v883_v49  ;;  %812 = vmatpush3.bf16.msra.mxu0 %v809_v46  ;;  %828 = vmatpush3.bf16.msra.mxu1 %v809_v46  ;;  %v387_v59 = vsel %vm386_vm12, %v887_v55, %v888_v54 }
 0x170   : > { %v813_v52 = vpack.c.bf16 %v380_v51, %v373_v48 }
 0x172   : > { %814 = vmatprep.subr.bf16.mxu0 %v813_v52  ;;  %825 = vmatprep.subr.bf16.mxu1 %v813_v52 }
 0x173   : > { %816 = vmatpush3.bf16.msra.mxu0 %v813_v52  ;;  %829 = vmatpush3.bf16.msra.mxu1 %v813_v52 }
 0x17f   : > { %v891_v56 = vpop.permute.xlu0 %890 }
 0x180   : > { %v893_v57 = vunpack.i.h.bf16 %v891_v56  ;;  %v892_v58 = vunpack.i.l.bf16 %v891_v56 }
 0x182   : > { %v395_v60 = vsel %vm366_vm10, %v892_v58, %v893_v57 }
 0x183   : > { %v817_v61 = vpack.c.bf16 %v395_v60, %v387_v59 }
 0x185   : > { %819 = vmatprep.subr.msk.bf16.mxu0 %vm818_vm14, %v817_v61  ;;  %826 = vmatprep.subr.msk.bf16.mxu1 %vm818_vm14, %v817_v61 }
 0x186   : > { %822 = vmatpush3.bf16.msk.msra.mxu0 %vm818_vm14, %v817_v61  ;;  %830 = vmatpush3.bf16.msk.msra.mxu1 %vm818_vm14, %v817_v61 }
 0x189   : > { %800 = vmatmul.mubr.msk.f32.vlgmr.msra.gmra.mrb[2].mxu0 %vm400_vm8, %v397_v62  ;;  %803 = vmatmul.mubr.msk.f32.vlgmr.msra.gmra.mrb[0].mxu1 %vm400_vm8, %v399_v63 }
 0x25c   : > { %v801_v0 = vpop.f32.mrb[2].mxu0  ;;  %v804_v1 = vpop.f32.mrb[0].mxu1 }
 0x25d   : > { %503 = vst [vmem:[%s501_s20 + $0x8] sm:$0xff] %v801_v0  ;;  %505 = vst [vmem:[%s501_s20 + $0x18] sm:$0xff] %v804_v1  ;;  %v481_v2 = vpop.f32.mrb[3].mxu0  ;;  %v491_v3 = vpop.f32.mrb[1].mxu1  ;;  %v512_v4 = vsel %vm506_vm15, %v804_v1, 0.0  ;;  %v510_v5 = vsel %vm506_vm15, %v801_v0, 0.0 }
 0x25e   : > { %502 = vst [vmem:[%s501_s20] sm:$0xff] %v481_v2  ;;  %504 = vst [vmem:[%s501_s20 + $0x10] sm:$0xff] %v491_v3  ;;  %523 = vadd.xlane.f32.xlu1 %v512_v4  ;;  %519 = vadd.xlane.f32.xlu0 %v510_v5  ;;  %v511_v7 = vsel %vm506_vm15, %v491_v3, 0.0  ;;  %v509_v8 = vsel %vm506_vm15, %v481_v2, 0.0  ;;  %v539_v9 = vmul.f32 %v510_v5, %v510_v5  ;;  %v601_v5 = vld [vmem:[%s1105_s3 + $0x10] sm:$0xff] (!%p765_p5) }
 0x25f   : > { %v538_v10 = vmul.f32 %v509_v8, %v509_v8  ;;  %v541_v6 = vmul.f32 %v512_v4, %v512_v4  ;;  %v540_v11 = vmul.f32 %v511_v7, %v511_v7 }
 0x262   : > { %521 = vadd.xlane.f32.xlu0 %v511_v7  ;;  %517 = vadd.xlane.f32.xlu1 %v509_v8  ;;  %v599_v7 = vld [vmem:[%s1105_s3] sm:$0xff] (!%p765_p5) }
 0x266   : > { %544 = vadd.xlane.f32.xlu1 %v539_v9  ;;  %542 = vadd.xlane.f32.xlu0 %v538_v10  ;;  %v602_v9 = vld [vmem:[%s1105_s3 + $0x18] sm:$0xff] (!%p765_p5) }
 0x26a   : > { %548 = vadd.xlane.f32.xlu1 %v541_v6  ;;  %546 = vadd.xlane.f32.xlu0 %v540_v11  ;;  %v600_v11 = vld [vmem:[%s1105_s3 + $0x8] sm:$0xff] (!%p765_p5) }
 0x2eb   : > { %v524_v14 = vpop.xlane.xlu1 %523  ;;  %v520_v15 = vpop.xlane.xlu0 %519 }
 0x2ec   : > { %v528_v16 = vadd.f32 %v524_v14, %v516_v12  ;;  %v526_v17 = vadd.f32 %v520_v15, %v514_v13 }
 0x2ee   : > { %533 = vst.msk [vmem:[#allocation2 + $0x18] sm:$0xff] %vm529_vm0, %v528_v16  ;;  %531 = vst.msk [vmem:[#allocation2 + $0x8] sm:$0xff] %vm529_vm0, %v526_v17 }
 0x2ef   : > { %v522_v20 = vpop.xlane.xlu0 %521  ;;  %v518_v21 = vpop.xlane.xlu1 %517 }
 0x2f0   : > { %v527_v22 = vadd.f32 %v522_v20, %v515_v18  ;;  %v525_v23 = vadd.f32 %v518_v21, %v513_v19  ;;  %v608_v18 = vld [vmem:[%s1106_s4 + $0x8] sm:$0xff] (!%p765_p5)  ;;  %v607_v19 = vld [vmem:[%s1106_s4] sm:$0xff] (!%p765_p5) }
 0x2f2   : > { %532 = vst.msk [vmem:[#allocation2 + $0x10] sm:$0xff] %vm529_vm0, %v527_v22  ;;  %530 = vst.msk [vmem:[#allocation2] sm:$0xff] %vm529_vm0, %v525_v23 }
 0x2f3   : > { %v545_v26 = vpop.xlane.xlu1 %544  ;;  %v543_v27 = vpop.xlane.xlu0 %542 }
 0x2f4   : > { %v551_v28 = vadd.f32 %v545_v26, %v535_v24  ;;  %v550_v29 = vadd.f32 %v543_v27, %v534_v25  ;;  %561 = sbr.rel (%p765_p5) target bundleno = 937 (0x3a9), region = 48  ;;  %v610_v25 = vld [vmem:[%s1106_s4 + $0x18] sm:$0xff] (!%p765_p5)  ;;  %v609_v26 = vld [vmem:[%s1106_s4 + $0x10] sm:$0xff] (!%p765_p5) }
 0x2f5   : > { %v565_v45 = vld [vmem:[#allocation2 + $0x18] sm:$0xff] (!%p765_p5)  ;;  %v563_v50 = vld [vmem:[#allocation2 + $0x8] sm:$0xff] (!%p765_p5) }
 0x2f6   : > { %555 = vst.msk [vmem:[#allocation3 + $0x8] sm:$0xff] %vm529_vm0, %v551_v28  ;;  %554 = vst.msk [vmem:[#allocation3] sm:$0xff] %vm529_vm0, %v550_v29  ;;  %v570_v48 = vmul.f32 (!%p765_p5), 0.0078125, %v565_v45  ;;  %v568_v53 = vmul.f32 (!%p765_p5), 0.0078125, %v563_v50  ;;  %v625_v45 = vld [vmem:[#allocation4 + $0x30] sm:$0xff] (!%p765_p5) }
 0x2f7   : > { %v549_v32 = vpop.xlane.xlu1 %548  ;;  %v547_v33 = vpop.xlane.xlu0 %546 }
 0x2f8   : > { %v553_v34 = vadd.f32 %v549_v32, %v537_v30  ;;  %v552_v35 = vadd.f32 %v547_v33, %v536_v31  ;;  %v582_v56 = vmul.f32 (!%p765_p5), %v570_v48, %v570_v48  ;;  %v580_v58 = vmul.f32 (!%p765_p5), %v568_v53, %v568_v53  ;;  %v620_v32 = vld [vmem:[#allocation4 + $0x8] sm:$0xff] (!%p765_p5) }
 0x2f9   : > { %v564_v36 = vld [vmem:[#allocation2 + $0x10] sm:$0xff] (!%p765_p5)  ;;  %v562_v41 = vld [vmem:[#allocation2] sm:$0xff] (!%p765_p5)  ;;  %v624_v33 = vld [vmem:[#allocation4 + $0x28] sm:$0xff] (!%p765_p5) }
 0x2fa   : > { %557 = vst.msk [vmem:[#allocation3 + $0x18] sm:$0xff] %vm529_vm0, %v553_v34  ;;  %556 = vst.msk [vmem:[#allocation3 + $0x10] sm:$0xff] %vm529_vm0, %v552_v35  ;;  %v569_v39 = vmul.f32 (!%p765_p5), 0.0078125, %v564_v36  ;;  %v567_v43 = vmul.f32 (!%p765_p5), 0.0078125, %v562_v41  ;;  %v619_v34 = vld [vmem:[#allocation4] sm:$0xff] (!%p765_p5)  ;;  %v622_v41 = vld [vmem:[#allocation4 + $0x18] sm:$0xff] (!%p765_p5) }
 0x2fb   : > { %v623_v35 = vld [vmem:[#allocation4 + $0x20] sm:$0xff] }
 0x2fc   : > { %v581_v47 = vmul.f32 %v569_v39, %v569_v39  ;;  %v579_v52 = vmul.f32 %v567_v43, %v567_v43 }
 0x2fd   : > { %v571_v42 = vld [vmem:[#allocation3] sm:$0xff]  ;;  %v572_v51 = vld [vmem:[#allocation3 + $0x8] sm:$0xff] }
 0x2fe   : > { %v575_v44 = vmul.f32 0.0078125, %v571_v42  ;;  %v576_v54 = vmul.f32 0.0078125, %v572_v51  ;;  %v626_v42 = vld [vmem:[#allocation4 + $0x38] sm:$0xff] }
 0x300   : > { %v583_v57 = vsub.f32 %v575_v44, %v579_v52  ;;  %v584_v62 = vsub.f32 %v576_v54, %v580_v58  ;;  %v621_v44 = vld [vmem:[#allocation4 + $0x10] sm:$0xff] }
 0x301   : > { %v573_v37 = vld [vmem:[#allocation3 + $0x10] sm:$0xff]  ;;  %v574_v46 = vld [vmem:[#allocation3 + $0x18] sm:$0xff] }
 0x302   : > { %v577_v40 = vmul.f32 0.0078125, %v573_v37  ;;  %v578_v49 = vmul.f32 0.0078125, %v574_v46  ;;  %v587_v61 = vmax.f32 %v583_v57, 0.0  ;;  %v588_v2 = vmax.f32 %v584_v62, 0.0 }
 0x304   : > { %v585_v55 = vsub.f32 %v577_v40, %v581_v47  ;;  %v586_v60 = vsub.f32 %v578_v49, %v582_v56  ;;  %v591_v1 = vadd.f32 1e-05, %v587_v61  ;;  %v592_v4 = vadd.f32 1e-05, %v588_v2 }
 0x306   : > { %v589_v59 = vmax.f32 %v585_v55, 0.0  ;;  %v590_v0 = vmax.f32 %v586_v60, 0.0 }
 0x308   : > { %v593_v63 = vadd.f32 1e-05, %v589_v59  ;;  %v594_v3 = vadd.f32 1e-05, %v590_v0 }
 0x30a   : > { %897 = vrsqrt.f32 %v593_v63 }
 0x30b   : > { %899 = vrsqrt.f32 %v591_v1 }
 0x30c   : > { %901 = vrsqrt.f32 %v594_v3 }
 0x30d   : > { %903 = vrsqrt.f32 %v592_v4 }
 0x314   : > { %v898_v8 = vpop.eup %897 }
 0x315   : > { %v900_v10 = vpop.eup %899  ;;  %v605_v6 = vmul.f32 %v898_v8, %v601_v5 }
 0x316   : > { %v902_v12 = vpop.eup %901  ;;  %v603_v13 = vmul.f32 %v900_v10, %v599_v7 }
 0x317   : > { %v904_v14 = vpop.eup %903  ;;  %639 = vperm.xlu1 %896, %v605_v6   ;;  %v606_v15 = vmul.f32 %v902_v12, %v602_v9  ;;  %v613_v22 = vmul.f32 %v605_v6, %v569_v39 }
 0x318   : > { %629 = vperm.xlu0 %895, %v603_v13   ;;  %v611_v16 = vmul.f32 %v603_v13, %v567_v43  ;;  %v604_v17 = vmul.f32 %v904_v14, %v600_v11 }
 0x319   : > { %v614_v21 = vmul.f32 %v606_v15, %v570_v48  ;;  %v617_v28 = vsub.f32 %v609_v26, %v613_v22 }
 0x31a   : > { %v612_v20 = vmul.f32 %v604_v17, %v568_v53  ;;  %v615_v24 = vsub.f32 %v607_v19, %v611_v16 }
 0x31b   : > { %644 = vperm.xlu1 %896, %v606_v15   ;;  %v618_v27 = vsub.f32 %v610_v25, %v614_v21 }
 0x31c   : > { %634 = vperm.xlu0 %895, %v604_v17   ;;  %v616_v23 = vsub.f32 %v608_v18, %v612_v20 }
 0x31f   : > { %662 = vperm.xlu1 %896, %v616_v23  }
 0x320   : > { %657 = vperm.xlu0 %895, %v615_v24  }
 0x323   : > { %672 = vperm.xlu1 %896, %v618_v27  }
 0x324   : > { %667 = vperm.xlu0 %895, %v617_v28  }
 0x396   : > { %v640_v29 = vpop.permute.xlu1 %639 }
 0x397   : > { %v630_v30 = vpop.permute.xlu0 %629  ;;  %v649_v55 = vmul.f32 %v640_v29, %v621_v44  ;;  %v653_v56 = vmul.f32 %v640_v29, %v625_v45 }
 0x398   : > { %v647_v39 = vmul.f32 %v630_v30, %v619_v34  ;;  %v651_v40 = vmul.f32 %v630_v30, %v623_v35 }
 0x39a   : > { %v645_v31 = vpop.permute.xlu1 %644 }
 0x39b   : > { %v635_v36 = vpop.permute.xlu0 %634  ;;  %v650_v51 = vmul.f32 %v645_v31, %v622_v41  ;;  %v654_v52 = vmul.f32 %v645_v31, %v626_v42 }
 0x39c   : > { %v648_v37 = vmul.f32 %v635_v36, %v620_v32  ;;  %v652_v38 = vmul.f32 %v635_v36, %v624_v33 }
 0x39e   : > { %v663_v43 = vpop.permute.xlu1 %662 }
 0x39f   : > { %v676_v46 = vadd.f32 %v663_v43, %v648_v37  ;;  %v680_v47 = vadd.f32 %v663_v43, %v652_v38  ;;  %v658_v48 = vpop.permute.xlu0 %657 }
 0x3a0   : > { %v675_v49 = vadd.f32 %v658_v48, %v647_v39  ;;  %v679_v50 = vadd.f32 %v658_v48, %v651_v40 }
 0x3a1   : > { %v684_v53 = vmax.f32 %v676_v46, 0.0  ;;  %v688_v54 = vmax.f32 %v680_v47, 0.0 }
 0x3a2   : > { %v683_v57 = vmax.f32 %v675_v49, 0.0  ;;  %v687_v58 = vmax.f32 %v679_v50, 0.0  ;;  %v673_v59 = vpop.permute.xlu1 %672 }
 0x3a3   : > { %692 = vst [vmem:[#allocation4 + $0x8] sm:$0xff] %v684_v53  ;;  %696 = vst [vmem:[#allocation4 + $0x28] sm:$0xff] %v688_v54  ;;  %v678_v60 = vadd.f32 %v673_v59, %v650_v51  ;;  %v682_v61 = vadd.f32 %v673_v59, %v654_v52  ;;  %v668_v62 = vpop.permute.xlu0 %667 }
 0x3a4   : > { %691 = vst [vmem:[#allocation4] sm:$0xff] %v683_v57  ;;  %695 = vst [vmem:[#allocation4 + $0x20] sm:$0xff] %v687_v58  ;;  %v677_v63 = vadd.f32 %v668_v62, %v649_v55  ;;  %v681_v0 = vadd.f32 %v668_v62, %v653_v56 }
 0x3a5   : > { %v686_v1 = vmax.f32 %v678_v60, 0.0  ;;  %v690_v2 = vmax.f32 %v682_v61, 0.0 }
 0x3a6   : > { %v685_v3 = vmax.f32 %v677_v63, 0.0  ;;  %v689_v4 = vmax.f32 %v681_v0, 0.0 }
 0x3a7   : > { %694 = vst [vmem:[#allocation4 + $0x18] sm:$0xff] %v686_v1  ;;  %698 = vst [vmem:[#allocation4 + $0x38] sm:$0xff] %v690_v2 }
 0x3a8   : > { %693 = vst [vmem:[#allocation4 + $0x10] sm:$0xff] %v685_v3  ;;  %697 = vst [vmem:[#allocation4 + $0x30] sm:$0xff] %v689_v4 }
 0x3a9 PF: > { %p835_p6 = scmp.eq.s32.totalorder %s993_s19, 1  ;;  %s954_s12 = smov [#allocation4]  }
 0x3aa   : > { %s705_s13 = sshll.u32 %s954_s12, 4  ;;  %s706_s13 = int_to_ptr.vmem [resolvable:$true] %s705_s13 }
 0x3ab   : > { %s905_s14 = scalar_lea.vmem %s706_s13, 1024  ;;  %p912_p10 = scmp.lt.s32.totalorder %s706_s13, %s706_s13 }
 0x3ac   : > { %p906_p7 = scmp.ne.s32.totalorder %s706_s13, %s905_s14  ;;  %p913_p11 = scmp.lt.s32.totalorder %s905_s14, %s905_s14 }
 0x3ae   : > { %p907_p8 = pnand %p906_p7, %p835_p6  ;;  %p914_p12 = por %p913_p11, %p912_p10 }
 0x3b0   : > { %p908_p9 = pneg %p907_p8 }
 0x3b2   : > { %p915_p13 = pnand %p914_p12, %p908_p9 }
 0x3b4   : > { %918 = shalt.err (!%p915_p13)
}
 0x3b5   : > { %s919_s17 = scalar_lea.hbm %s1107_s5, 1024 }
 0x3b6   : > { %p920_p0 = scmp.ne.s32.totalorder %s1107_s5, %s919_s17  ;;  %p925_p3 = scmp.lt.u32.totalorder %s919_s17, %s1107_s5 }
 0x3b8   : > { %p921_p1 = pnand %p920_p0, %p835_p6 }
 0x3ba   : > { %p922_p2 = pneg %p921_p1 }
 0x3bc   : > { %p927_p4 = pnand %p925_p3, %p922_p2 }
 0x3be   : > { %930 = shalt.err (!%p927_p4)
}
 0x3bf   : > { %s955_s24 = smov 128   ;;  %s956_s25 = smov 8  }
 0x3c0   : > { %832 = dma.vmem_to_hbm [thread:$0]  (%p835_p6), %s706_s13, 1024, %s1107_s5, [#allocation5], %s955_s24, %s955_s24, %s956_s25  }
 0x3c1   : > { %936 = dma.done.wait (%p835_p6), [#allocation5], 1024  }
 0x3c2   : > { %938 = vsyncadd (%p835_p6), [#allocation5], 4294966272 }
 0x3c3 PF: > { %s16_s18 = sadd.s32 1, %s941_s18  }
 0x3c4   : > { %p13_p5 = scmp.ge.s32.totalorder %s16_s18, 4  }
 0x3c6   :  { %15 = sbr.rel (!%p13_p5) target bundleno = 1 (0x1), region = 76 }
 0x3cd   :  { %721 = vsyncpa [#allocation5], 1 }
 0x3ce   :  { %723 = vsyncpa [#allocation5 + $0x1], 1 }

</bundles_post_ra>
